<compile_context>
chip_gen: v5e
topology: v5e:2x2
jax: 0.10.0
libtpu: 0.0.40
codegen_flags: <defaults>
</compile_context>

<pallas_src>
import functools

import jax
import jax.numpy as jnp
from jax import lax
from jax.experimental import pallas as pl
from jax.experimental.pallas import tpu as pltpu

EPS_BN = 1e-5   # nn.BatchNorm1d default eps
EPS_LN = 1e-5   # nn.LayerNorm default eps
LANES = 128


def _silu(x):
    return x * jax.nn.sigmoid(x)


def _round_up(x, m):
    return -(-x // m) * m


def _pick_tile(B):
    """Largest multiple-of-8 divisor of B, capped at 1024, leaving >= 2 grid
    steps (v7x has 2 TensorCores) whenever B is big enough."""
    cap = B // 2 if B >= 16 else B
    cap = min(cap, 1024)
    cap = max(8, (cap // 8) * 8)
    for cand in range(cap, 7, -8):
        if B % cand == 0:
            return cand
    return 8


# --------------------------------------------------------------------------
# Kernel
# --------------------------------------------------------------------------
def ffnn_kernel(ids_ref, feat_ref, w1f_ref, wemb_ref, w2_ref, w3_ref, wh_ref,
                vec_ref, out_ref, *, H, VOCAB):
    TB = ids_ref.shape[0]

    # ---- packed small parameters (f32): one (8, 128) VMEM tile ----
    vecs = vec_ref[...]
    b1 = vecs[0:1, :4 * H]
    b2 = vecs[1:2, :2 * H]
    b3 = vecs[2:3, :H]
    bh = vecs[3:4, :out_ref.shape[1]]

    # ---- embedding branch: fully precomputed + folded into layer 1 ----
    # one-hot gather of the (VOCAB, 4H) table; padding_idx=0 handled at prep.
    # NOTE: out-of-range ids produce a zero contribution (ids assumed valid).
    ids = ids_ref[...]                                            # (TB, 1) i32
    onehot = (lax.broadcasted_iota(jnp.int32, (TB, VOCAB), 1) == ids
              ).astype(jnp.bfloat16)                              # (TB, VOCAB)

    # ---- encoder (all BatchNorms pre-folded into weights/biases) ----
    # layer 1: split matmul == concat([feature, e]) @ W1, bf16 MXU, f32 acc.
    h = (jnp.dot(feat_ref[...], w1f_ref[...],
                 preferred_element_type=jnp.float32)
         + jnp.dot(onehot, wemb_ref[...],
                   preferred_element_type=jnp.float32)
         + b1)
    h = _silu(h)
    h = _silu(jnp.dot(h.astype(jnp.bfloat16), w2_ref[...],
                      preferred_element_type=jnp.float32) + b2)
    h = _silu(jnp.dot(h.astype(jnp.bfloat16), w3_ref[...],
                      preferred_element_type=jnp.float32) + b3)

    # ---- fused heads: one lane-dense (TB, 128) matmul, bf16 store ----
    out = jnp.dot(h.astype(jnp.bfloat16), wh_ref[...],
                  preferred_element_type=jnp.float32) + bh
    out_ref[...] = out.astype(out_ref.dtype)


# --------------------------------------------------------------------------
# Wrapper
# --------------------------------------------------------------------------
def ffnn_forward(investment_embed, feature, kp, *, block_b=None):
    """investment_embed: (B, 1) int32 ids; feature: (B, F) float."""
    B, F = feature.shape
    H = kp["w3"].shape[1]
    VOCAB = kp["wemb"].shape[0]
    HP = kp["wh"].shape[1]          # padded fused-head width (multiple of 128)
    T = kp["num_targets"]

    TB = block_b if block_b is not None else _pick_tile(B)
    assert B % TB == 0 and TB % 8 == 0, "batch tile must divide B, 8-aligned"
    # TODO(synk): batches not divisible by 8 would need padding/masking.

    args = (investment_embed.astype(jnp.int32),
            feature.astype(jnp.bfloat16),        # halves feature HBM read
            kp["w1f"], kp["wemb"], kp["w2"], kp["w3"], kp["wh"], kp["vecs"])

    def const_spec(shape):
        return pl.BlockSpec(shape, lambda i: (0,) * len(shape))

    in_specs = [
        pl.BlockSpec((TB, 1), lambda i: (i, 0)),      # ids      (batch-tiled)
        pl.BlockSpec((TB, F), lambda i: (i, 0)),      # feature  (batch-tiled)
        const_spec(kp["w1f"].shape),                  # weights: VMEM-resident
        const_spec(kp["wemb"].shape),
        const_spec(kp["w2"].shape),
        const_spec(kp["w3"].shape),
        const_spec(kp["wh"].shape),
        const_spec(kp["vecs"].shape),
    ]
    out_specs = pl.BlockSpec((TB, HP), lambda i: (i, 0))
    out_shape = jax.ShapeDtypeStruct((B, HP), jnp.bfloat16)

    kernel = functools.partial(ffnn_kernel, H=H, VOCAB=VOCAB)
    out = pl.pallas_call(
        kernel,
        grid=(B // TB,),
        in_specs=in_specs,
        out_specs=out_specs,
        out_shape=out_shape,
        compiler_params=pltpu.CompilerParams(
            dimension_semantics=("parallel",),        # megacore on v7x
            vmem_limit_bytes=32 * 1024 * 1024),       # v5e default is 16 MiB
    )(*args)

    out = out.astype(jnp.float32)
    return out[:, :T], out[:, T:2 * T]


# --------------------------------------------------------------------------
# Param prep: fold BN, precompute + fold embedding branch, fuse heads,
# pack small vectors, cast weights to bf16
# --------------------------------------------------------------------------
def prepare_kernel_params(p, T):
    f32, bf16 = jnp.float32, jnp.bfloat16
    s0f = lax.rsqrt(p["v0f"] + EPS_BN)     # (1, F)
    s0e = lax.rsqrt(p["v0e"] + EPS_BN)     # (1, E)
    s1 = lax.rsqrt(p["v1"] + EPS_BN)       # (1, 4H)
    s2 = lax.rsqrt(p["v2"] + EPS_BN)       # (1, 2H)
    s3 = lax.rsqrt(p["v3"] + EPS_BN)       # (1, H)

    # BN0 (input side) and BN1 (output side) folded into Linear1 (exact).
    w1f = p["w1f"] * s0f.T * s1
    w1e = p["w1e"] * s0e.T * s1
    b1 = (p["b1"] - (p["m0f"] * s0f) @ p["w1f"]
                  - (p["m0e"] * s0e) @ p["w1e"] - p["m1"]) * s1
    # BN2 folded into Linear2, BN3 into Linear3.
    w2 = p["w2"] * s2
    b2 = (p["b2"] - p["m2"]) * s2
    w3 = p["w3"] * s3
    b3 = (p["b3"] - p["m3"]) * s3

    # Precompute the whole embedding branch per vocab row (exact, f32):
    #   e_table[v] = SiLU(LN(emb_table[v] @ wp + bp))
    # then fold through the embedding half of (BN-folded) Linear1.
    e = p["emb_table"] @ p["wp"] + p["bp"]
    mu = jnp.mean(e, axis=-1, keepdims=True)
    var = jnp.mean(jnp.square(e - mu), axis=-1, keepdims=True)
    e = _silu((e - mu) * lax.rsqrt(var + EPS_LN) * p["g"] + p["beta"])
    wemb = e @ w1e                                        # (VOCAB, 4H)

    H = w3.shape[1]
    wh_raw = jnp.concatenate([p["wr"], p["wc"]], axis=1)     # (H, 2T)
    bh_raw = jnp.concatenate([p["br"], p["bc"]], axis=1)     # (1, 2T)
    HP = _round_up(max(LANES, wh_raw.shape[1]), LANES)
    wh = jnp.zeros((H, HP), f32).at[:, :2 * T].set(wh_raw)

    vec_w = _round_up(max(LANES, b1.shape[1], b2.shape[1], b3.shape[1], HP),
                      LANES)

    def row(v):
        return jnp.zeros((1, vec_w), f32).at[:, :v.shape[1]].set(v)

    vecs = jnp.concatenate(
        [row(b1), row(b2), row(b3), row(bh_raw)]
        + [jnp.zeros((1, vec_w), f32)] * 4, axis=0)          # (8, vec_w)

    return dict(w1f=w1f.astype(bf16), wemb=wemb.astype(bf16),
                w2=w2.astype(bf16), w3=w3.astype(bf16), wh=wh.astype(bf16),
                vecs=vecs, num_targets=T)


# --------------------------------------------------------------------------
# Pure-JAX reference mirroring the PyTorch forward (eval mode, unfolded, f32)
# --------------------------------------------------------------------------
def ffnn_reference(investment_embed, feature, params):
    e = jnp.take(params["emb_table"], investment_embed[:, 0], axis=0)
    e = e @ params["wp"] + params["bp"]
    mu = jnp.mean(e, axis=-1, keepdims=True)
    var = jnp.mean(jnp.square(e - mu), axis=-1, keepdims=True)
    e = (e - mu) / jnp.sqrt(var + EPS_LN) * params["g"] + params["beta"]
    e = _silu(e)

    x = jnp.concatenate([feature, e], axis=1)
    m0 = jnp.concatenate([params["m0f"], params["m0e"]], axis=1)
    v0 = jnp.concatenate([params["v0f"], params["v0e"]], axis=1)
    x = (x - m0) / jnp.sqrt(v0 + EPS_BN)

    w1 = jnp.concatenate([params["w1f"], params["w1e"]], axis=0)
    h = x @ w1 + params["b1"]
    h = _silu((h - params["m1"]) / jnp.sqrt(params["v1"] + EPS_BN))
    h = h @ params["w2"] + params["b2"]
    h = _silu((h - params["m2"]) / jnp.sqrt(params["v2"] + EPS_BN))
    h = h @ params["w3"] + params["b3"]
    h = _silu((h - params["m3"]) / jnp.sqrt(params["v3"] + EPS_BN))
    return h @ params["wr"] + params["br"], h @ params["wc"] + params["bc"]


def init_params(key, vocab, E, F, H, T):
    ks = jax.random.split(key, 8)
    n = lambda k, s: (0.02 * jax.random.normal(k, s)).astype(jnp.float32)

    emb_table = n(ks[0], (vocab, E))
    emb_table = emb_table.at[0].set(0.0)            # padding_idx = 0

    w1 = n(ks[2], (F + E, 4 * H))
    return dict(
        emb_table=emb_table,
        # embedding_proj
        wp=n(ks[1], (E, E)), bp=jnp.zeros((1, E), jnp.float32),
        g=jnp.ones((1, E), jnp.float32), beta=jnp.zeros((1, E), jnp.float32),
        # encoder BN0 running stats, Linear1 (split), BN1
        m0f=jnp.zeros((1, F), jnp.float32), v0f=jnp.ones((1, F), jnp.float32),
        m0e=jnp.zeros((1, E), jnp.float32), v0e=jnp.ones((1, E), jnp.float32),
        w1f=w1[:F], w1e=w1[F:], b1=jnp.zeros((1, 4 * H), jnp.float32),
        m1=jnp.zeros((1, 4 * H), jnp.float32), v1=jnp.ones((1, 4 * H), jnp.float32),
        # Linear2, BN2
        w2=n(ks[3], (4 * H, 2 * H)), b2=jnp.zeros((1, 2 * H), jnp.float32),
        m2=jnp.zeros((1, 2 * H), jnp.float32), v2=jnp.ones((1, 2 * H), jnp.float32),
        # Linear3, BN3
        w3=n(ks[4], (2 * H, H)), b3=jnp.zeros((1, H), jnp.float32),
        m3=jnp.zeros((1, H), jnp.float32), v3=jnp.ones((1, H), jnp.float32),
        # heads
        wr=n(ks[5], (H, T)), br=jnp.zeros((1, T), jnp.float32),
        wc=n(ks[6], (H, T)), bc=jnp.zeros((1, T), jnp.float32),
    )


if __name__ == "__main__":
    # config: investment_embed_size=16, embed_size=32, feature_size=32,
    #         hidden_size=32, target_cols=2, dropout (identity in eval)
    VOCAB, E, F, H, T = 16, 32, 32, 32, 2
    B = 32                              # auto tile -> TB=16, 2 grid steps

    key = jax.random.PRNGKey(0)
    kparam, ki, kf = jax.random.split(key, 3)
    raw_params = init_params(kparam, VOCAB, E, F, H, T)
    kernel_params = prepare_kernel_params(raw_params, T)

    investment_embed = jax.random.randint(ki, (B, 1), 0, VOCAB, dtype=jnp.int32)
    feature = jax.random.normal(kf, (B, F), dtype=jnp.float32)

    reg_pred, class_pred = ffnn_forward(investment_embed, feature,
                                        kernel_params)
    jax.block_until_ready((reg_pred, class_pred))

    reg_ref, cls_ref = ffnn_reference(investment_embed, feature, raw_params)
    assert reg_pred.shape == (B, T) and class_pred.shape == (B, T)
    # bf16-MXU kernel vs f32 reference: loosened tolerances (outputs ~1e-4).
    assert jnp.allclose(reg_pred, reg_ref, atol=5e-5, rtol=5e-2)
    assert jnp.allclose(class_pred, cls_ref, atol=5e-5, rtol=5e-2)

    print("KERNEL_OK")
</pallas_src>

<mosaic_0001>
module attributes {stable_mosaic.version = 11 : i64} {
  func.func @ffnn_kernel(%arg0: i32, %arg1: memref<16x1xi32, #tpu.memory_space<vmem>>, %arg2: memref<16x32xbf16, #tpu.memory_space<vmem>>, %arg3: memref<32x128xbf16, #tpu.memory_space<vmem>>, %arg4: memref<16x128xbf16, #tpu.memory_space<vmem>>, %arg5: memref<128x64xbf16, #tpu.memory_space<vmem>>, %arg6: memref<64x32xbf16, #tpu.memory_space<vmem>>, %arg7: memref<32x128xbf16, #tpu.memory_space<vmem>>, %arg8: memref<8x128xf32, #tpu.memory_space<vmem>>, %arg9: memref<16x128xbf16, #tpu.memory_space<vmem>>) attributes {dimension_semantics = [#tpu.dimension_semantics<parallel>], iteration_bounds = array<i64: 2>, scalar_prefetch = 0 : i64, scratch_operands = 0 : i64, tpu.core_type = #tpu.core_type<tc>, window_params = [{transform_indices = @transform_0, window_bounds = array<i64: 16, 1>}, {transform_indices = @transform_1, window_bounds = array<i64: 16, 32>}, {pipeline_mode = #tpu.pipeline_mode<synchronous>, transform_indices = @transform_2, window_bounds = array<i64: 32, 128>}, {pipeline_mode = #tpu.pipeline_mode<synchronous>, transform_indices = @transform_3, window_bounds = array<i64: 16, 128>}, {pipeline_mode = #tpu.pipeline_mode<synchronous>, transform_indices = @transform_4, window_bounds = array<i64: 128, 64>}, {pipeline_mode = #tpu.pipeline_mode<synchronous>, transform_indices = @transform_5, window_bounds = array<i64: 64, 32>}, {pipeline_mode = #tpu.pipeline_mode<synchronous>, transform_indices = @transform_6, window_bounds = array<i64: 32, 128>}, {pipeline_mode = #tpu.pipeline_mode<synchronous>, transform_indices = @transform_7, window_bounds = array<i64: 8, 128>}, {transform_indices = @transform_8, window_bounds = array<i64: 16, 128>}]} {
    %c0 = arith.constant 0 : index
    %c0_0 = arith.constant 0 : index
    %0 = vector.load %arg8[%c0, %c0_0] : memref<8x128xf32, #tpu.memory_space<vmem>>, vector<8x128xf32>
    %1 = vector.extract_strided_slice %0 {offsets = [0, 0], sizes = [1, 128], strides = [1, 1]} : vector<8x128xf32> to vector<1x128xf32>
    %2 = vector.extract_strided_slice %0 {offsets = [1, 0], sizes = [1, 64], strides = [1, 1]} : vector<8x128xf32> to vector<1x64xf32>
    %3 = vector.extract_strided_slice %0 {offsets = [2, 0], sizes = [1, 32], strides = [1, 1]} : vector<8x128xf32> to vector<1x32xf32>
    %4 = vector.extract_strided_slice %0 {offsets = [3, 0], sizes = [1, 128], strides = [1, 1]} : vector<8x128xf32> to vector<1x128xf32>
    %c0_1 = arith.constant 0 : index
    %c0_2 = arith.constant 0 : index
    %5 = vector.load %arg1[%c0_1, %c0_2] : memref<16x1xi32, #tpu.memory_space<vmem>>, vector<16x1xi32>
    %6 = tpu.iota {dimensions = array<i32: 1>} : vector<16x16xi32>
    %7 = vector.broadcast %5 : vector<16x1xi32> to vector<16x16xi32>
    %8 = arith.cmpi eq, %6, %7 : vector<16x16xi32>
    %9 = arith.extui %8 : vector<16x16xi1> to vector<16x16xi32>
    %10 = arith.sitofp %9 : vector<16x16xi32> to vector<16x16xf32>
    %11 = arith.truncf %10 : vector<16x16xf32> to vector<16x16xbf16>
    %c0_3 = arith.constant 0 : index
    %c0_4 = arith.constant 0 : index
    %12 = vector.load %arg2[%c0_3, %c0_4] : memref<16x32xbf16, #tpu.memory_space<vmem>>, vector<16x32xbf16>
    %c0_5 = arith.constant 0 : index
    %c0_6 = arith.constant 0 : index
    %13 = vector.load %arg3[%c0_5, %c0_6] : memref<32x128xbf16, #tpu.memory_space<vmem>>, vector<32x128xbf16>
    %cst = arith.constant dense<0.000000e+00> : vector<16x128xf32>
    %14 = tpu.matmul %12, %13, %cst {dimension_numbers = #tpu.dot_dimension_numbers<[1], [0], [0], [1], [0, 0, 1, 1], [], []>} : vector<16x32xbf16>, vector<32x128xbf16>, vector<16x128xf32> -> vector<16x128xf32>
    %c0_7 = arith.constant 0 : index
    %c0_8 = arith.constant 0 : index
    %15 = vector.load %arg4[%c0_7, %c0_8] : memref<16x128xbf16, #tpu.memory_space<vmem>>, vector<16x128xbf16>
    %cst_9 = arith.constant dense<0.000000e+00> : vector<16x128xf32>
    %16 = tpu.matmul %11, %15, %cst_9 {dimension_numbers = #tpu.dot_dimension_numbers<[1], [0], [0], [1], [0, 0, 1, 1], [], []>} : vector<16x16xbf16>, vector<16x128xbf16>, vector<16x128xf32> -> vector<16x128xf32>
    %17 = arith.addf %14, %16 : vector<16x128xf32>
    %18 = vector.broadcast %1 : vector<1x128xf32> to vector<16x128xf32>
    %19 = arith.addf %17, %18 : vector<16x128xf32>
    %20 = arith.negf %19 : vector<16x128xf32>
    %21 = math.exp %20 : vector<16x128xf32>
    %cst_10 = arith.constant 1.000000e+00 : f32
    %22 = vector.broadcast %cst_10 : f32 to vector<16x128xf32>
    %23 = arith.addf %22, %21 : vector<16x128xf32>
    %24 = arith.divf %22, %23 : vector<16x128xf32>
    %25 = arith.mulf %19, %24 : vector<16x128xf32>
    %26 = arith.truncf %25 : vector<16x128xf32> to vector<16x128xbf16>
    %c0_11 = arith.constant 0 : index
    %c0_12 = arith.constant 0 : index
    %27 = vector.load %arg5[%c0_11, %c0_12] : memref<128x64xbf16, #tpu.memory_space<vmem>>, vector<128x64xbf16>
    %cst_13 = arith.constant dense<0.000000e+00> : vector<16x64xf32>
    %28 = tpu.matmul %26, %27, %cst_13 {dimension_numbers = #tpu.dot_dimension_numbers<[1], [0], [0], [1], [0, 0, 1, 1], [], []>} : vector<16x128xbf16>, vector<128x64xbf16>, vector<16x64xf32> -> vector<16x64xf32>
    %29 = vector.broadcast %2 : vector<1x64xf32> to vector<16x64xf32>
    %30 = arith.addf %28, %29 : vector<16x64xf32>
    %31 = arith.negf %30 : vector<16x64xf32>
    %32 = math.exp %31 : vector<16x64xf32>
    %cst_14 = arith.constant 1.000000e+00 : f32
    %33 = vector.broadcast %cst_14 : f32 to vector<16x64xf32>
    %34 = arith.addf %33, %32 : vector<16x64xf32>
    %35 = arith.divf %33, %34 : vector<16x64xf32>
    %36 = arith.mulf %30, %35 : vector<16x64xf32>
    %37 = arith.truncf %36 : vector<16x64xf32> to vector<16x64xbf16>
    %c0_15 = arith.constant 0 : index
    %c0_16 = arith.constant 0 : index
    %38 = vector.load %arg6[%c0_15, %c0_16] : memref<64x32xbf16, #tpu.memory_space<vmem>>, vector<64x32xbf16>
    %cst_17 = arith.constant dense<0.000000e+00> : vector<16x32xf32>
    %39 = tpu.matmul %37, %38, %cst_17 {dimension_numbers = #tpu.dot_dimension_numbers<[1], [0], [0], [1], [0, 0, 1, 1], [], []>} : vector<16x64xbf16>, vector<64x32xbf16>, vector<16x32xf32> -> vector<16x32xf32>
    %40 = vector.broadcast %3 : vector<1x32xf32> to vector<16x32xf32>
    %41 = arith.addf %39, %40 : vector<16x32xf32>
    %42 = arith.negf %41 : vector<16x32xf32>
    %43 = math.exp %42 : vector<16x32xf32>
    %cst_18 = arith.constant 1.000000e+00 : f32
    %44 = vector.broadcast %cst_18 : f32 to vector<16x32xf32>
    %45 = arith.addf %44, %43 : vector<16x32xf32>
    %46 = arith.divf %44, %45 : vector<16x32xf32>
    %47 = arith.mulf %41, %46 : vector<16x32xf32>
    %48 = arith.truncf %47 : vector<16x32xf32> to vector<16x32xbf16>
    %c0_19 = arith.constant 0 : index
    %c0_20 = arith.constant 0 : index
    %49 = vector.load %arg7[%c0_19, %c0_20] : memref<32x128xbf16, #tpu.memory_space<vmem>>, vector<32x128xbf16>
    %cst_21 = arith.constant dense<0.000000e+00> : vector<16x128xf32>
    %50 = tpu.matmul %48, %49, %cst_21 {dimension_numbers = #tpu.dot_dimension_numbers<[1], [0], [0], [1], [0, 0, 1, 1], [], []>} : vector<16x32xbf16>, vector<32x128xbf16>, vector<16x128xf32> -> vector<16x128xf32>
    %51 = vector.broadcast %4 : vector<1x128xf32> to vector<16x128xf32>
    %52 = arith.addf %50, %51 : vector<16x128xf32>
    %53 = arith.truncf %52 : vector<16x128xf32> to vector<16x128xbf16>
    %c0_22 = arith.constant 0 : index
    %c0_23 = arith.constant 0 : index
    %54 = vector.load %arg9[%c0_22, %c0_23] : memref<16x128xbf16, #tpu.memory_space<vmem>>, vector<16x128xbf16>
    tpu.vector_store %arg9[%c0_22, %c0_23], %53 {strides = array<i32>} : memref<16x128xbf16, #tpu.memory_space<vmem>>, vector<16x128xbf16>,
    return
  }
  func.func @transform_0(%arg0: i32) -> (i32, i32) {
    %c0_i32 = arith.constant 0 : i32
    %c0_i32_0 = arith.constant 0 : i32
    return %arg0, %c0_i32 : i32, i32
  }
  func.func @transform_1(%arg0: i32) -> (i32, i32) {
    %c0_i32 = arith.constant 0 : i32
    %c0_i32_0 = arith.constant 0 : i32
    return %arg0, %c0_i32 : i32, i32
  }
  func.func @transform_2(%arg0: i32) -> (i32, i32) {
    %c0_i32 = arith.constant 0 : i32
    %c0_i32_0 = arith.constant 0 : i32
    %c0_i32_1 = arith.constant 0 : i32
    return %c0_i32, %c0_i32_0 : i32, i32
  }
  func.func @transform_3(%arg0: i32) -> (i32, i32) {
    %c0_i32 = arith.constant 0 : i32
    %c0_i32_0 = arith.constant 0 : i32
    %c0_i32_1 = arith.constant 0 : i32
    return %c0_i32, %c0_i32_0 : i32, i32
  }
  func.func @transform_4(%arg0: i32) -> (i32, i32) {
    %c0_i32 = arith.constant 0 : i32
    %c0_i32_0 = arith.constant 0 : i32
    %c0_i32_1 = arith.constant 0 : i32
    return %c0_i32, %c0_i32_0 : i32, i32
  }
  func.func @transform_5(%arg0: i32) -> (i32, i32) {
    %c0_i32 = arith.constant 0 : i32
    %c0_i32_0 = arith.constant 0 : i32
    %c0_i32_1 = arith.constant 0 : i32
    return %c0_i32, %c0_i32_0 : i32, i32
  }
  func.func @transform_6(%arg0: i32) -> (i32, i32) {
    %c0_i32 = arith.constant 0 : i32
    %c0_i32_0 = arith.constant 0 : i32
    %c0_i32_1 = arith.constant 0 : i32
    return %c0_i32, %c0_i32_0 : i32, i32
  }
  func.func @transform_7(%arg0: i32) -> (i32, i32) {
    %c0_i32 = arith.constant 0 : i32
    %c0_i32_0 = arith.constant 0 : i32
    %c0_i32_1 = arith.constant 0 : i32
    return %c0_i32, %c0_i32_0 : i32, i32
  }
  func.func @transform_8(%arg0: i32) -> (i32, i32) {
    %c0_i32 = arith.constant 0 : i32
    %c0_i32_0 = arith.constant 0 : i32
    return %arg0, %c0_i32 : i32, i32
  }
}

</mosaic_0001>

<bundles_post_ra>
// kernel: tpu_custom_call.1
= control target key start
LH: loop header
LB: loop body
LE: loop exit
PB: predicated region body
PF: predicated region fallthrough
CT: control target
= control target key end

     0   :  { %13 = vsyncpa [#allocation3], 0  ;;  %s1254_s0 = inlined_call_operand.vmem [shape: s32[32,1], index: 0, kind: input, shape index: {}]   ;;  %s1255_s1 = inlined_call_operand.vmem [shape: bf16[32,32], index: 1, kind: input, shape index: {}]   ;;  %s1256_s2 = inlined_call_operand.vmem [shape: bf16[32,128], index: 2, kind: input, shape index: {}]   ;;  %s1257_s3 = inlined_call_operand.vmem [shape: bf16[16,128], index: 3, kind: input, shape index: {}]   ;;  %s1258_s4 = inlined_call_operand.vmem [shape: bf16[128,64], index: 4, kind: input, shape index: {}]   ;;  %s1259_s5 = inlined_call_operand.vmem [shape: bf16[64,32], index: 5, kind: input, shape index: {}]   ;;  %s1260_s6 = inlined_call_operand.vmem [shape: bf16[32,128], index: 6, kind: input, shape index: {}]   ;;  %s1261_s7 = inlined_call_operand.vmem [shape: f32[8,128], index: 7, kind: input, shape index: {}]   ;;  %s1262_s8 = inlined_call_operand.hbm [shape: bf16[32,128], index: 8, kind: output, shape index: {}]  }
   0x1   :  { %15 = vsyncpa [#allocation3 + $0x1], 0  ;;  %s1102_s27 = smov 0   ;;  %s1104_s28 = smov 0  }
   0x2   :  { %s1106_s29 = smov 0   ;;  %s1108_s30 = smov 0  }
   0x3 LB: > { %s1123_s9 = sadd.s32 4294967295, %s1051_s30   ;;  %s799_s10 = sadd.s32 4294967294, %s1051_s30   ;;  %s1051_s30 = sphi %s1108_s30, %s1268_s30   ;;  %s1047_s29 = sphi %s1106_s29, %s1267_s29   ;;  %s1043_s28 = sphi %s1104_s28, %s1266_s28   ;;  %s1039_s27 = sphi %s1102_s27, %s1265_s27  }
   0x4   : > { %s1127_s11 = sadd.s32 1, %s1051_s30   ;;  %s206_s12 = sadd.s32 1, %s1047_s29 }
   0x5   : > { %s203_s13 = ssub.s32 %s1051_s30, %s1127_s11  ;;  %p216_p0 = scmp.ne.s32.totalorder %s1047_s29, %s1043_s28 }
   0x6   : > { %p204_p1 = scmp.eq.s32.totalorder %s203_s13, 0  ;;  %p217_p2 = scmp.eq.s32.totalorder %s1123_s9, 1 }
   0x7   : > { %p222_p3 = scmp.ne.s32.totalorder %s1043_s28, %s1039_s27  ;;  %p223_p4 = scmp.eq.s32.totalorder %s799_s10, 1 }
   0x8   : > { %s1138_s14 = scalar_select %p204_p1, %s1047_s29, %s206_s12  }
   0x9   : > { %p1140_p5 = por %p217_p2, %p216_p0  ;;  %p1144_p6 = por %p223_p4, %p222_p3 }
   0xa   : > { %p802_p7 = scmp.ge.s32.totalorder %s1051_s30, 1  ;;  %p277_p8 = scmp.lt.s32.totalorder %s1051_s30, 3 }
   0xc   : > { %p278_p9 = pnand %p802_p7, %p277_p8 }
   0xd   : > { %s804_s17 = sshll.u32 (!%p278_p9), %s1123_s9, 1  ;;  %s915_s25 = sshll.u32 (!%p278_p9), %s1123_s9, 3 }
   0xe   : > { %281 = sbr.rel (%p278_p9) target bundleno = 810 (0x32a), region = 52  ;;  %p317_p10 = scmp.lt.s32.totalorder (!%p278_p9), %s804_s17, 3 }
   0xf   : > { %s721_s12 = scalar_lea.hbm (!%p278_p9), %s1262_s8, %s915_s25 }
  0x10   : > { %s724_s19 = sshll.u32 (!%p278_p9), %s721_s12, 4  ;;  %s725_s19 = int_to_ptr.hbm [resolvable:$true] %s724_s19 }
  0x13   : > { %v899_v0 = vld [vmem:[%s1256_s2 + $0x8] sm:$0xff]  ;;  %v1053_v1 = vmov 0   ;;  %s1270_s17 = smov (!%p317_p10, %s804_s17), 3  ;;  %v898_v4 = vld [vmem:[%s1256_s2] sm:$0xff]  ;;  %vm397_vm0 = vcmask 261120   ;;  %v333_v7 = vlaneseq  ;;  %v1054_v11 = vmov 0.0  }
  0x14   : > { %964 = vset.pattern.permute.xlu0 %v1053_v1  ;;  %407 = vmatpush.bf16.msra.mxu1 %v899_v0  ;;  %s805_s20 = sshll.u32 %s1270_s17, 3  ;;  %s807_s24 = sshll.u32 %s1270_s17, 2  ;;  %v900_v6 = vld [vmem:[%s1257_s3] sm:$0xff]  ;;  %vm362_vm3 = vcmask 130048   ;;  %v908_v15 = vld [vmem:[%s1258_s4 + $0x38] sm:$0xff]  ;;  %v907_v16 = vld [vmem:[%s1258_s4 + $0x30] sm:$0xff] }
  0x15   : > { %s320_s23 = scalar_lea.vmem %s1254_s0, %s805_s20  ;;  %s326_s10 = scalar_lea.vmem %s1255_s1, %s807_s24  ;;  %373 = vmatpush.bf16.msra.mxu0 %v900_v6  ;;  %v334_v9 = vand.u32 127, %v333_v7  ;;  %524 = vmatpush.bf16.msra.mxu2 %v908_v15  ;;  %v906_v17 = vld [vmem:[%s1258_s4 + $0x28] sm:$0xff]  ;;  %v905_v18 = vld [vmem:[%s1258_s4 + $0x20] sm:$0xff]  ;;  %v904_v19 = vld [vmem:[%s1258_s4 + $0x18] sm:$0xff] }
  0x16   : > { %v331_v2 = vld [vmem:[%s320_s23] sm:$0xff]  ;;  %v332_v3 = vld [vmem:[%s320_s23 + $0x8] sm:$0xff]  ;;  %v903_v22 = vld [vmem:[%s1258_s4 + $0x10] sm:$0xff]  ;;  %s313_s23 = sand.u32 1, %s1043_s28   ;;  %s1003_s17 = sshra.s32 %s725_s19, 4  ;;  %s1004_s17 = int_to_ptr.hbm [resolvable:$true] %s1003_s17 }
  0x17   : > { %336 = vperm.xlu0 %964, %v331_v2   ;;  %v897_v5 = vld [vmem:[%s326_s10] sm:$0xff]  ;;  %v902_v26 = vld [vmem:[%s1258_s4 + $0x8] sm:$0xff]  ;;  %v912_v62 = vld [vmem:[%s1259_s5 + $0x18] sm:$0xff]  ;;  %s803_s24 = sshll.u32 %s313_s23, 3  ;;  %s710_s9 = scalar_lea.sflag [#allocation3], %s313_s23 }
  0x18   : > { %408 = vmatpush.bf16.msra.mxu1 %v898_v4  ;;  %v1185_v20 = vld [vmem:[%s1261_s7] sm:$0xff]  ;;  %620 = vmatpush.bf16.msra.mxu3 %v912_v62  ;;  %v911_v0 = vld [vmem:[%s1259_s5 + $0x10] sm:$0xff]  ;;  %s315_s13 = scalar_lea.vmem [#allocation2], %s803_s24  ;;  %s1005_s20 = scalar_lea.hbm %s1004_s17, 8 }
  0x19   : > { %525 = vmatpush.bf16.msra.mxu2 %v907_v16  ;;  %v415_v23 = vperm.slane %v1185_v20, 0  ;;  %v901_v29 = vld [vmem:[%s1258_s4] sm:$0xff]  ;;  %v475_v63 = vperm.slane %v1185_v20, 1  ;;  %s1224_s18 = sshll.u32 %s315_s13, 4  ;;  %p1006_p11 = scmp.ne.s32.totalorder %s1004_s17, %s1005_s20  ;;  %s723_s18 = int_to_ptr.vmem [resolvable:$true] %s1224_s18 }
  0x1a   : > { %s1009_s24 = scalar_lea.hbm %s1262_s8, 16  ;;  %p1010_p0 = scmp.lt.s32.totalorder %s1004_s17, %s1262_s8 }
  0x1b   : > { %827 = vmatmul.msk.bf16.vlgmr.msra.gmra.mxu1 %vm397_vm0, %v897_v5  ;;  %v909_v5 = vld [vmem:[%s1259_s5] sm:$0xff]  ;;  %p1007_p12 = pnand %p1006_p11, %p1140_p5  ;;  %p1011_p1 = scmp.lt.s32.totalorder %s1009_s24, %s1005_s20 }
  0x1c   : > { %621 = vmatpush.bf16.msra.mxu3 %v911_v0 }
  0x1d   : > { %526 = vmatpush.bf16.msra.mxu2 %v906_v17  ;;  %p1008_p13 = pneg %p1007_p12  ;;  %p1012_p2 = por %p1011_p1, %p1010_p0 }
  0x1f   : > { %339 = vperm.xlu0 %964, %v332_v3   ;;  %v910_v3 = vld [vmem:[%s1259_s5 + $0x8] sm:$0xff]  ;;  %p1013_p3 = pnand %p1012_p2, %p1008_p13 }
  0x20   : > { %622 = vmatpush.bf16.msra.mxu3 %v910_v3 }
  0x21   : > { %527 = vmatpush.bf16.msra.mxu2 %v905_v18 }
  0x24   : > { %623 = vmatpush.bf16.msra.mxu3 %v909_v5 }
  0x25   : > { %528 = vmatpush.bf16.msra.mxu2 %v904_v19 }
  0x29   : > { %529 = vmatpush.bf16.msra.mxu2 %v903_v22 }
  0x2d   : > { %530 = vmatpush.bf16.msra.mxu2 %v902_v26 }
  0x31   : > { %531 = vmatpush.bf16.msra.mxu2 %v901_v29 }
  0x89   : > { %v337_v8 = vpop.permute.xlu0 %336 }
  0x8a   : > { %vm341_vm1 = vcmp.eq.s32.totalorder %v334_v9, %v337_v8 }
  0x8b   : > { %v808_v12 = vsel %vm341_vm1, 1.0, %v1054_v11 }
  0x91   : > { %v340_v10 = vpop.permute.xlu0 %339 }
  0x92   : > { %vm342_vm2 = vcmp.eq.s32.totalorder %v334_v9, %v340_v10 }
  0x93   : > { %v809_v13 = vsel %vm342_vm2, 1.0, %v1054_v11 }
  0x94   : > { %v347_v14 = vpack.c.bf16 %v809_v13, %v808_v12 }
  0x96   : > { %814 = vmatmul.msk.bf16.vlgmr.msra.gmra.mxu0 %vm362_vm3, %v347_v14 }
  0x98   : > { %v410_v21 = vpop.f32.mrf.mxu1 }
  0xa0   : > { %v412_v30 = vpop.f32.mrf.mxu1 }
 0x113   : > { %v375_v24 = vpop.f32.mrf.mxu0 }
 0x114   : > { %v411_v25 = vadd.f32 %v410_v21, %v375_v24 }
 0x116   : > { %v416_v27 = vadd.f32 %v415_v23, %v411_v25 }
 0x118   : > { %v828_v28 = vmul.f32 -1.442695, %v416_v27 }
 0x11a   : > { %965 = vpow2.f32 %v828_v28 }
 0x11b   : > { %v377_v31 = vpop.f32.mrf.mxu0 }
 0x11c   : > { %v413_v32 = vadd.f32 %v412_v30, %v377_v31 }
 0x11e   : > { %v417_v33 = vadd.f32 %v415_v23, %v413_v32 }
 0x120   : > { %v966_v34 = vpop.eup %965  ;;  %v829_v35 = vmul.f32 -1.442695, %v417_v33 }
 0x121   : > { %v424_v36 = vadd.f32 1.0, %v966_v34 }
 0x122   : > { %967 = vpow2.f32 %v829_v35 }
 0x123   : > { %969 = vrcp.f32 %v424_v36  ;;  %v437_v46 = vand.u32 2147483648, %v424_v36  ;;  %vm431_vm5 = vweird.f32 %v424_v36  ;;  %v435_v47 = vand.u32 2147483647, %v424_v36 }
 0x125   : > { %v438_v53 = vor.u32 1.1754944e-38, %v437_v46  ;;  %vm436_vm8 = vcmp.eq.f32.partialorder %v435_v47, 8.507059e+37 }
 0x128   : > { %v968_v37 = vpop.eup %967 }
 0x129   : > { %v970_v38 = vpop.eup %969  ;;  %v425_v39 = vadd.f32 1.0, %v968_v37  ;;  %v587_v37 = vperm.slane %v1185_v20, 2 }
 0x12a   : > { %v427_v40 = vmul.f32 %v970_v38, %v424_v36  ;;  %vm432_vm4 = vweird.f32 %v970_v38 }
 0x12b   : > { %971 = vrcp.f32 %v425_v39  ;;  %vm433_vm6 = vmor %vm431_vm5, %vm432_vm4  ;;  %v452_v49 = vand.u32 2147483648, %v425_v39  ;;  %v450_v52 = vand.u32 2147483647, %v425_v39  ;;  %vm446_vm9 = vweird.f32 %v425_v39 }
 0x12c   : > { %v428_v41 = vsub.f32 1.0, %v427_v40  ;;  %vm612_vm5 = vcmask 523264   ;;  %v914_v40 = vld [vmem:[%s1260_s6 + $0x8] sm:$0xff] }
 0x12d   : > { %v453_v56 = vor.u32 1.1754944e-38, %v452_v49  ;;  %vm451_vm11 = vcmp.eq.f32.partialorder %v450_v52, 8.507059e+37  ;;  %697 = vmatpush.bf16.msrb.mxu0 %v914_v40 }
 0x12e   : > { %v429_v42 = vmul.f32 %v970_v38, %v428_v41 }
 0x130   : > { %v430_v44 = vadd.f32 %v970_v38, %v429_v42  ;;  %v913_v42 = vld [vmem:[%s1260_s6] sm:$0xff] }
 0x131   : > { %v972_v43 = vpop.eup %971  ;;  %698 = vmatpush.bf16.msrb.mxu0 %v913_v42 }
 0x132   : > { %v442_v45 = vmul.f32 %v972_v43, %v425_v39  ;;  %v434_v50 = vsel %vm433_vm6, %v970_v38, %v430_v44  ;;  %vm447_vm7 = vweird.f32 %v972_v43 }
 0x133   : > { %v439_v55 = vsel %vm436_vm8, %v438_v53, %v434_v50  ;;  %vm448_vm10 = vmor %vm446_vm9, %vm447_vm7 }
 0x134   : > { %v443_v48 = vsub.f32 1.0, %v442_v45  ;;  %v456_v59 = vmul.f32 %v439_v55, %v416_v27 }
 0x136   : > { %v444_v51 = vmul.f32 %v972_v43, %v443_v48 }
 0x138   : > { %v445_v54 = vadd.f32 %v972_v43, %v444_v51 }
 0x13a   : > { %v449_v57 = vsel %vm448_vm10, %v972_v43, %v445_v54 }
 0x13b   : > { %v454_v58 = vsel %vm451_vm11, %v453_v56, %v449_v57 }
 0x13c   : > { %v457_v60 = vmul.f32 %v454_v58, %v417_v33 }
 0x13e   : > { %v458_v61 = vpack.c.bf16 %v457_v60, %v456_v59 }
 0x140   : > { %532 = vmatmul.bf16.vlgmr.msra.gmra.mxu2 %v458_v61 }
 0x1c3   : > { %v533_v1 = vpop.f32.mrf.mxu2 }
 0x1c4   : > { %v534_v2 = vadd.f32 %v533_v1, %v475_v63 }
 0x1c6   : > { %v862_v4 = vmul.f32 -1.442695, %v534_v2 }
 0x1c8   : > { %973 = vpow2.f32 %v862_v4 }
 0x1cb   : > { %v535_v6 = vpop.f32.mrf.mxu2 }
 0x1cc   : > { %v536_v7 = vadd.f32 %v535_v6, %v475_v63 }
 0x1ce   : > { %v974_v8 = vpop.eup %973  ;;  %v863_v9 = vmul.f32 -1.442695, %v536_v7 }
 0x1cf   : > { %v544_v10 = vadd.f32 1.0, %v974_v8 }
 0x1d0   : > { %975 = vpow2.f32 %v863_v9 }
 0x1d1   : > { %977 = vrcp.f32 %v544_v10  ;;  %v557_v21 = vand.u32 2147483648, %v544_v10  ;;  %vm551_vm13 = vweird.f32 %v544_v10  ;;  %v555_v22 = vand.u32 2147483647, %v544_v10 }
 0x1d3   : > { %v558_v28 = vor.u32 1.1754944e-38, %v557_v21  ;;  %vm556_vm1 = vcmp.eq.f32.partialorder %v555_v22, 8.507059e+37 }
 0x1d6   : > { %v976_v11 = vpop.eup %975 }
 0x1d7   : > { %v978_v12 = vpop.eup %977  ;;  %v545_v13 = vadd.f32 1.0, %v976_v11 }
 0x1d8   : > { %v547_v14 = vmul.f32 %v978_v12, %v544_v10  ;;  %vm552_vm12 = vweird.f32 %v978_v12  ;;  %v675_v10 = vperm.slane %v1185_v20, 3 }
 0x1d9   : > { %979 = vrcp.f32 %v545_v13  ;;  %vm553_vm14 = vmor %vm551_vm13, %vm552_vm12  ;;  %v572_v24 = vand.u32 2147483648, %v545_v13  ;;  %v570_v27 = vand.u32 2147483647, %v545_v13  ;;  %vm566_vm2 = vweird.f32 %v545_v13 }
 0x1da   : > { %v548_v15 = vsub.f32 1.0, %v547_v14 }
 0x1db   : > { %v573_v31 = vor.u32 1.1754944e-38, %v572_v24  ;;  %vm571_vm4 = vcmp.eq.f32.partialorder %v570_v27, 8.507059e+37 }
 0x1dc   : > { %v549_v16 = vmul.f32 %v978_v12, %v548_v15 }
 0x1de   : > { %v550_v18 = vadd.f32 %v978_v12, %v549_v16 }
 0x1df   : > { %v980_v17 = vpop.eup %979 }
 0x1e0   : > { %v562_v19 = vmul.f32 %v980_v17, %v545_v13  ;;  %v554_v25 = vsel %vm553_vm14, %v978_v12, %v550_v18  ;;  %vm567_vm15 = vweird.f32 %v980_v17 }
 0x1e1   : > { %v559_v30 = vsel %vm556_vm1, %v558_v28, %v554_v25  ;;  %vm568_vm3 = vmor %vm566_vm2, %vm567_vm15 }
 0x1e2   : > { %v563_v23 = vsub.f32 1.0, %v562_v19  ;;  %v576_v34 = vmul.f32 %v559_v30, %v534_v2 }
 0x1e4   : > { %v564_v26 = vmul.f32 %v980_v17, %v563_v23 }
 0x1e6   : > { %v565_v29 = vadd.f32 %v980_v17, %v564_v26 }
 0x1e8   : > { %v569_v32 = vsel %vm568_vm3, %v980_v17, %v565_v29 }
 0x1e9   : > { %v574_v33 = vsel %vm571_vm4, %v573_v31, %v569_v32 }
 0x1ea   : > { %v577_v35 = vmul.f32 %v574_v33, %v536_v7 }
 0x1ec   : > { %v578_v36 = vpack.c.bf16 %v577_v35, %v576_v34 }
 0x1ee   : > { %880 = vmatmul.msk.bf16.vlgmr.msra.gmra.mxu3 %vm612_vm5, %v578_v36 }
 0x271   : > { %v625_v38 = vpop.f32.mrf.mxu3 }
 0x272   : > { %v626_v39 = vadd.f32 %v625_v38, %v587_v37 }
 0x274   : > { %v881_v41 = vmul.f32 -1.442695, %v626_v39 }
 0x276   : > { %981 = vpow2.f32 %v881_v41 }
 0x279   : > { %v627_v43 = vpop.f32.mrf.mxu3 }
 0x27a   : > { %v628_v44 = vadd.f32 %v627_v43, %v587_v37 }
 0x27c   : > { %v982_v45 = vpop.eup %981  ;;  %v882_v46 = vmul.f32 -1.442695, %v628_v44 }
 0x27d   : > { %v636_v47 = vadd.f32 1.0, %v982_v45 }
 0x27e   : > { %983 = vpow2.f32 %v882_v46 }
 0x27f   : > { %985 = vrcp.f32 %v636_v47  ;;  %v649_v57 = vand.u32 2147483648, %v636_v47  ;;  %vm643_vm7 = vweird.f32 %v636_v47  ;;  %v647_v58 = vand.u32 2147483647, %v636_v47 }
 0x281   : > { %v650_v0 = vor.u32 1.1754944e-38, %v649_v57  ;;  %vm648_vm10 = vcmp.eq.f32.partialorder %v647_v58, 8.507059e+37 }
 0x284   : > { %v984_v48 = vpop.eup %983 }
 0x285   : > { %v986_v49 = vpop.eup %985  ;;  %v637_v50 = vadd.f32 1.0, %v984_v48 }
 0x286   : > { %v639_v51 = vmul.f32 %v986_v49, %v636_v47  ;;  %vm644_vm6 = vweird.f32 %v986_v49 }
 0x287   : > { %987 = vrcp.f32 %v637_v50  ;;  %vm645_vm8 = vmor %vm643_vm7, %vm644_vm6  ;;  %v664_v60 = vand.u32 2147483648, %v637_v50  ;;  %v662_v63 = vand.u32 2147483647, %v637_v50  ;;  %vm658_vm11 = vweird.f32 %v637_v50 }
 0x288   : > { %v640_v52 = vsub.f32 1.0, %v639_v51 }
 0x289   : > { %v665_v3 = vor.u32 1.1754944e-38, %v664_v60  ;;  %vm663_vm13 = vcmp.eq.f32.partialorder %v662_v63, 8.507059e+37 }
 0x28a   : > { %v641_v53 = vmul.f32 %v986_v49, %v640_v52 }
 0x28c   : > { %v642_v55 = vadd.f32 %v986_v49, %v641_v53 }
 0x28d   : > { %v988_v54 = vpop.eup %987 }
 0x28e   : > { %v654_v56 = vmul.f32 %v988_v54, %v637_v50  ;;  %v646_v61 = vsel %vm645_vm8, %v986_v49, %v642_v55  ;;  %vm659_vm9 = vweird.f32 %v988_v54 }
 0x28f   : > { %v651_v2 = vsel %vm648_vm10, %v650_v0, %v646_v61  ;;  %vm660_vm12 = vmor %vm658_vm11, %vm659_vm9 }
 0x290   : > { %v655_v59 = vsub.f32 1.0, %v654_v56  ;;  %v668_v6 = vmul.f32 %v651_v2, %v626_v39 }
 0x292   : > { %v656_v62 = vmul.f32 %v988_v54, %v655_v59 }
 0x294   : > { %v657_v1 = vadd.f32 %v988_v54, %v656_v62 }
 0x296   : > { %v661_v4 = vsel %vm660_vm12, %v988_v54, %v657_v1 }
 0x297   : > { %v666_v5 = vsel %vm663_vm13, %v665_v3, %v661_v4 }
 0x298   : > { %v669_v7 = vmul.f32 %v666_v5, %v628_v44 }
 0x29a   : > { %v670_v8 = vpack.c.bf16 %v669_v7, %v668_v6 }
 0x29c   : > { %891 = vmatmul.msk.bf16.vlgmr.msrb.gmra.mxu0 %vm397_vm0, %v670_v8 }
 0x319   : > { %v700_v9 = vpop.f32.mrf.mxu0 }
 0x31a   : > { %v701_v12 = vadd.f32 %v700_v9, %v675_v10 }
 0x321   : > { %v702_v11 = vpop.f32.mrf.mxu0 }
 0x322   : > { %v703_v13 = vadd.f32 %v702_v11, %v675_v10 }
 0x324   : > { %v919_v14 = vpack.c.bf16 %v703_v13, %v701_v12 }
 0x326   : > { %920 = vst [vmem:[%s315_s13] sm:$0xff] %v919_v14  }
 0x327   : > { %1016 = shalt.err (!%p1013_p3)
}
 0x328   : > { %s1055_s23 = smov 64   ;;  %s1056_s10 = smov 4  }
 0x329   : > { %921 = dma.vmem_to_hbm [thread:$0]  (%p1140_p5), %s723_s18, 128, %s725_s19, %s710_s9, %s1055_s23, %s1055_s23, %s1056_s10  }
 0x32a PF: > { %p927_p4 = scmp.ge.s32.totalorder %s1051_s30, 2  ;;  %s739_s12 = sand.u32 1, %s1039_s27  }
 0x32b   : > { %s740_s13 = scalar_lea.sflag [#allocation3], %s739_s12 }
 0x32c   : > { %p924_p7 = pnand %p927_p4, %p1144_p6 }
 0x32e   : > { %p925_p8 = pneg %p924_p7 }
 0x330   : > { %1034 = dma.done.wait (%p925_p8), %s740_s13, 128  }
 0x331   : > { %1036 = vsyncadd (%p925_p8), %s740_s13, 4294967168  ;;  %p18_p9 = scmp.ge.s32.totalorder %s1127_s11, 4   ;;  %s1265_s27 = smov %s1043_s28 }
 0x332   : > { %s1266_s28 = smov %s1047_s29  ;;  %s1267_s29 = smov %s1138_s14 }
 0x333   : > { %s1268_s30 = smov %s1127_s11  ;;  %20 = sbr.rel (!%p18_p9) target bundleno = 3 (0x3), region = 90 }
 0x338   :  { %746 = vsyncpa [#allocation3], 1 }
 0x339   :  { %748 = vsyncpa [#allocation3 + $0x1], 1 }

</bundles_post_ra>
